<compile_context>
chip_gen: v5e
topology: v5e:2x2
jax: 0.10.0
libtpu: 0.0.40
codegen_flags: <defaults>
</compile_context>

<pallas_src>
import jax
import jax.numpy as jnp
from jax.experimental import pallas as pl
from jax.experimental.pallas import tpu as pltpu

_LANES = 128
_SUBLANES = 8


def _identity_kernel(x_ref, o_ref):
    # AutoEncoder.forward(x) -> x : elementwise identity (pure copy).
    o_ref[...] = x_ref[...]


def _pick_cols(n):
    # Widest lane-dense trailing dim that divides the flat length.
    for cols in (4096, 2048, 1024, 512, 256, 128):
        if n % cols == 0:
            return cols
    return None


def _vmem_capacity_bytes():
    # Generation-aware budget; fall back to the smallest (v7x, 64 MiB) if the
    # query is unavailable so sizing stays conservative.
    try:
        return int(pltpu.get_tpu_info().vmem_capacity_bytes)
    except Exception:
        return 64 << 20


def _copy_lane_aligned(x_flat):
    """Pallas identity copy of a flat buffer whose length is a multiple of 128."""
    n = x_flat.size
    dtype = x_flat.dtype
    itemsize = x_flat.dtype.itemsize
    cols = _pick_cols(n)
    rows = n // cols
    x2d = x_flat.reshape(rows, cols)

    # ~2 MiB blocks: measured copy-style kernels hit ~85-86% of HBM roofline
    # at this size.  Double-buffered in+out = 4 buffers ≤ 8 MiB, which fits
    # under every generation's scoped-VMEM default (16/32/32 MiB v5e/v6e/v7x).
    vmem = _vmem_capacity_bytes()
    block_bytes = min(2 << 20, max(_SUBLANES * cols * itemsize, vmem // 32))
    target_rows = max(_SUBLANES, block_bytes // (cols * itemsize))

    if rows <= target_rows:
        # Whole slab in a single block: no per-step overhead for small inputs.
        tile_rows = rows
        grid = (1,)
    else:
        tile_rows = max(_SUBLANES, (target_rows // _SUBLANES) * _SUBLANES)
        grid = (pl.cdiv(rows, tile_rows),)  # ragged last block handled by Pallas

    out2d = pl.pallas_call(
        _identity_kernel,
        out_shape=jax.ShapeDtypeStruct((rows, cols), dtype),
        grid_spec=pltpu.PrefetchScalarGridSpec(
            num_scalar_prefetch=0,
            grid=grid,
            in_specs=[pl.BlockSpec((tile_rows, cols), lambda i: (i, 0))],
            out_specs=pl.BlockSpec((tile_rows, cols), lambda i: (i, 0)),
        ),
        compiler_params=pltpu.CompilerParams(
            # "parallel" lets v7x shard the axis across its 2 TensorCores;
            # it is a no-op on single-TC v5e/v6e.
            dimension_semantics=("parallel",),
            vmem_limit_bytes=32 << 20,
        ),
    )(x2d)
    return out2d.reshape(-1)


def autoencoder_forward(x: jax.Array) -> jax.Array:
    """Pallas implementation of AutoEncoder.forward (identity)."""
    orig_shape = x.shape
    n = x.size
    if n == 0:
        return x

    x_flat = x.reshape(-1)
    rem = n % _LANES
    if rem == 0:
        # Common case: lane-aligned, no padding / concatenate round trips.
        return _copy_lane_aligned(x_flat).reshape(orig_shape)

    # Ragged case: push the 128-aligned prefix through the kernel, append the
    # (<128 element) tail.
    # TODO(synk): for very large unaligned inputs, a masked tail store inside
    # the kernel would avoid this final concatenate.
    n_main = n - rem
    if n_main == 0:
        return x
    main = _copy_lane_aligned(x_flat[:n_main])
    return jnp.concatenate([main, x_flat[n_main:]]).reshape(orig_shape)


def get_latent_features(x):
    # Matches the PyTorch module: `return` (i.e. None) — no encoder defined.
    # TODO(synk): module defines no encoder, so there are no latent features to compute.
    return None


if __name__ == "__main__":
    key = jax.random.PRNGKey(0)
    # Small NCHW input consistent with a conv-style autoencoder interface.
    x = jax.random.normal(key, (2, 4, 16, 16), dtype=jnp.float32)

    y = autoencoder_forward(x)
    jax.block_until_ready(y)

    assert y.shape == x.shape and y.dtype == x.dtype
    assert bool(jnp.all(y == x))

    print("KERNEL_OK")
</pallas_src>

<mosaic_0001>
module attributes {stable_mosaic.version = 11 : i64} {
  func.func @_identity_kernel(%arg0: i32, %arg1: memref<1x2048xf32, #tpu.memory_space<vmem>>, %arg2: memref<1x2048xf32, #tpu.memory_space<vmem>>) attributes {dimension_semantics = [#tpu.dimension_semantics<parallel>], iteration_bounds = array<i64: 1>, scalar_prefetch = 0 : i64, scratch_operands = 0 : i64, tpu.core_type = #tpu.core_type<tc>, window_params = [{transform_indices = @transform_0, window_bounds = array<i64: 1, 2048>}, {transform_indices = @transform_1, window_bounds = array<i64: 1, 2048>}]} {
    %c0 = arith.constant 0 : index
    %c0_0 = arith.constant 0 : index
    %0 = vector.load %arg1[%c0, %c0_0] : memref<1x2048xf32, #tpu.memory_space<vmem>>, vector<1x2048xf32>
    %c0_1 = arith.constant 0 : index
    %c0_2 = arith.constant 0 : index
    %1 = vector.load %arg2[%c0_1, %c0_2] : memref<1x2048xf32, #tpu.memory_space<vmem>>, vector<1x2048xf32>
    tpu.vector_store %arg2[%c0_1, %c0_2], %0 {strides = array<i32>} : memref<1x2048xf32, #tpu.memory_space<vmem>>, vector<1x2048xf32>,
    return
  }
  func.func @transform_0(%arg0: i32) -> (i32, i32) {
    %c0_i32 = arith.constant 0 : i32
    %c0_i32_0 = arith.constant 0 : i32
    return %arg0, %c0_i32 : i32, i32
  }
  func.func @transform_1(%arg0: i32) -> (i32, i32) {
    %c0_i32 = arith.constant 0 : i32
    %c0_i32_0 = arith.constant 0 : i32
    return %arg0, %c0_i32 : i32, i32
  }
}

</mosaic_0001>

<bundles_post_ra>
// kernel: tpu_custom_call.1
= control target key start
LH: loop header
LB: loop body
LE: loop exit
PB: predicated region body
PF: predicated region fallthrough
CT: control target
= control target key end

     0   :  { %6 = vsyncpa [#allocation3], 0  ;;  %s116_s0 = inlined_call_operand.hbm [shape: f32[1,2048], index: 0, kind: input, shape index: {}]   ;;  %s117_s1 = inlined_call_operand.hbm [shape: f32[1,2048], index: 1, kind: output, shape index: {}]  }
   0x1   :  { %7 = vsyncpa [#allocation4], 0  ;;  %s13_s8 = sshll.u32 %s116_s0, 4  ;;  %s98_s9 = smov [#allocation2]   ;;  %s14_s8 = int_to_ptr.hbm [resolvable:$true] %s13_s8 }
   0x2   :  { %s15_s10 = sshll.u32 %s98_s9, 4  ;;  %s16_s10 = int_to_ptr.vmem [resolvable:$true] %s15_s10 }
   0x3   :  { %18 = dma.hbm_to_vmem [thread:$0]  %s14_s8, 256, %s16_s10, [#allocation3]  }
   0x4   :  { %94 = dma.done.wait [#allocation3], 256  }
   0x5   :  { %95 = vsyncadd [#allocation3], 4294967040  ;;  %s99_s11 = smov [#allocation5]   ;;  %s34_s15 = sshll.u32 %s117_s1, 4  ;;  %v23_v0 = vld [vmem:[#allocation2] sm:$0xff]  ;;  %v24_v1 = vld [vmem:[#allocation2 + $0x8] sm:$0xff]  ;;  %s35_s15 = int_to_ptr.hbm [resolvable:$true] %s34_s15 }
   0x6   :  { %s32_s12 = sshll.u32 %s99_s11, 4  ;;  %25 = vst [vmem:[#allocation5] sm:$0xff] %v23_v0  ;;  %s33_s12 = int_to_ptr.vmem [resolvable:$true] %s32_s12 }
   0x7   :  { %26 = vst [vmem:[#allocation5 + $0x8] sm:$0xff] %v24_v1 }
   0x8   :  { %37 = dma.vmem_to_hbm [thread:$0]  %s33_s12, 256, %s35_s15, [#allocation4]  }
   0x9   :  { %96 = dma.done.wait [#allocation4], 256  }
   0xa   :  { %97 = vsyncadd [#allocation4], 4294967040 }
   0xb   :  { %42 = vsyncpa [#allocation3], 1 }
   0xc   :  { %43 = vsyncpa [#allocation4], 1 }

</bundles_post_ra>
